<compile_context>
chip_gen: v7x
topology: tpu7x:2x2x1
jax: 0.10.0
libtpu: 0.0.40
codegen_flags: <defaults>
</compile_context>

<pallas_src>
import jax
import jax.numpy as jnp
from jax.experimental import pallas as pl
from jax.experimental.pallas import tpu as pltpu

D_PAD = 8      # coordinate axis padded to one sublane group (real xyz in rows 0..2)
TILE_N = 512   # atoms per grid step on the lane axis (multiple of 256 for v6e/v7x MXU)
LANE = 128


def _energy_force_kernel(pos_ref, w1_ref, bw_ref, ids_ref, e_mol_ref, force_ref):
    """One atom tile of the fused energy + analytic-force computation.

    Inputs (VMEM blocks):
      pos:   (D_pad, TILE_N)   atom positions, atoms on lanes
      w1:    (D_pad, H)        first-layer weights (padded coord rows are zero)
      bw:    (H, 2)            column 0 = first-layer bias, column 1 = readout w2
      ids:   (TILE_N, 1)       int32 molecule id per atom (-1 for padded atoms)
    Outputs:
      e_mol: (1, 1, M_pad)     per-tile partial per-molecule energy (reduced in wrapper)
      force: (D_pad, TILE_N)   per-atom force, transposed (lane-dense over atoms)
    """
    pos = pos_ref[...]                                   # (D_pad, TILE_N)
    w1 = w1_ref[...]                                     # (D_pad, H)
    bw = bw_ref[...]                                     # (H, 2)
    b1 = bw[:, 0:1]                                      # (H, 1)
    w2 = bw[:, 1:2]                                      # (H, 1)

    tile_n = pos.shape[-1]
    m_pad = e_mol_ref.shape[-1]

    # z^T = W1^T @ pos^T : contraction over D expressed with dot_general so W1
    # is only shipped once (no precomputed transpose input).
    z_t = jax.lax.dot_general(
        w1, pos,
        dimension_numbers=(((0,), (0,)), ((), ())),
        preferred_element_type=jnp.float32) + b1         # (H, TILE_N)
    t_t = jnp.tanh(z_t)                                  # (H, TILE_N)

    # In-kernel one-hot membership built from int32 ids (VPU compare against a
    # lane iota).  Padded atoms carry id = -1, which matches no column, so they
    # contribute nothing.  This replaces a dense f32 HBM input of the same size.
    ids = ids_ref[...]                                   # (TILE_N, 1) int32
    memb = (jax.lax.broadcasted_iota(jnp.int32, (tile_n, m_pad), 1)
            == ids).astype(jnp.float32)                  # (TILE_N, M_pad)

    # Per-molecule partial energy, reassociated: MXU op with (H, M_pad) output
    # (contraction depth = tile_n, a 256-multiple), then a VPU multiply by w2
    # and a sublane reduction (no width-1 MXU outputs).
    tm = jnp.dot(t_t, memb, preferred_element_type=jnp.float32)   # (H, M_pad)
    e_tile = jnp.sum(w2 * tm, axis=0, keepdims=True)              # (1, M_pad)
    e_mol_ref[...] = e_tile[None]                                 # (1, 1, M_pad)

    # Analytic force (transposed, lane-dense over atoms):
    #   F^T = -(W1 @ ((1 - tanh(z)^2) * w2))
    g_t = (1.0 - t_t * t_t) * w2                                  # (H, TILE_N)
    force_ref[...] = -jnp.dot(w1, g_t,
                              preferred_element_type=jnp.float32)  # (D_pad, TILE_N)


def predict_energy_and_forces(positions, w1, b1, w2, mol_idx, n_molecules,
                              *, tile_n=TILE_N):
    """positions (N,3), w1 (3,H), b1 (H,), w2 (H,), mol_idx (N,) int.

    Returns (per_molecule_energy (M,1), per_atom_force (N,3)).
    """
    N, d_real = positions.shape
    H = w1.shape[1]
    n_tiles = pl.cdiv(N, tile_n)
    n_pad = n_tiles * tile_n
    m_pad = pl.cdiv(n_molecules, LANE) * LANE

    # Transposed, lane-dense layout: atoms on the 128-wide lane axis.
    pos_t = jnp.zeros((D_PAD, n_pad), jnp.float32)
    pos_t = pos_t.at[:d_real, :N].set(positions.astype(jnp.float32).T)

    # Pad W1 coordinate rows with zeros so padded coord lanes stay inert.
    w1_pad = jnp.zeros((D_PAD, H), jnp.float32).at[:d_real, :].set(
        w1.astype(jnp.float32))

    # b1 / w2 merged into one tiny resident block (H, 2).
    bw = jnp.stack([b1.astype(jnp.float32), w2.astype(jnp.float32)], axis=1)

    # int32 molecule ids; padded atoms map to no molecule (-1 sentinel).
    ids = jnp.full((n_pad, 1), -1, jnp.int32).at[:N, 0].set(
        mol_idx.astype(jnp.int32))

    flops = int(n_tiles) * (2 * D_PAD * H * tile_n          # z
                            + 2 * H * tile_n * m_pad        # t^T @ memb
                            + 2 * D_PAD * H * tile_n)       # force
    bytes_accessed = (4 * (D_PAD * n_pad * 2                # pos in + force out
                           + D_PAD * H + 2 * H              # weights
                           + int(n_tiles) * m_pad)          # partial-energy out
                      + 4 * n_pad)                          # int32 ids column
    transcendentals = n_pad * H

    e_partial, force_t = pl.pallas_call(
        _energy_force_kernel,
        out_shape=(
            jax.ShapeDtypeStruct((n_tiles, 1, m_pad), jnp.float32),
            jax.ShapeDtypeStruct((D_PAD, n_pad), jnp.float32),
        ),
        grid_spec=pltpu.PrefetchScalarGridSpec(
            num_scalar_prefetch=0,
            grid=(n_tiles,),
            in_specs=[
                pl.BlockSpec((D_PAD, tile_n), lambda i: (0, i)),    # pos tile
                pl.BlockSpec((D_PAD, H), lambda i: (0, 0)),         # w1 (resident)
                pl.BlockSpec((H, 2), lambda i: (0, 0)),             # b1|w2 (resident)
                pl.BlockSpec((tile_n, 1), lambda i: (i, 0)),        # mol ids tile
            ],
            out_specs=(
                pl.BlockSpec((1, 1, m_pad), lambda i: (i, 0, 0)),   # per-tile energy
                pl.BlockSpec((D_PAD, tile_n), lambda i: (0, i)),    # force tile
            ),
        ),
        compiler_params=pltpu.CompilerParams(
            # No cross-tile accumulation anymore -> atom-tile axis is parallel
            # (v7x megacore splits the grid across its two TensorCores).
            dimension_semantics=("parallel",),
            # Tiny working set now that the one-hot is generated in-kernel; 32 MiB
            # is safe on v5e/v6e/v7x and leaves headroom for larger tile_n/m_pad.
            vmem_limit_bytes=32 * 1024 * 1024,
        ),
        cost_estimate=pl.CostEstimate(
            flops=flops,
            transcendentals=transcendentals,
            bytes_accessed=bytes_accessed),
    )(pos_t, w1_pad, bw, ids)

    # Reduce per-tile partial energies (tiny: n_tiles x m_pad).
    e_mol_row = jnp.sum(e_partial[:, 0, :], axis=0)                 # (M_pad,)
    e_mol = e_mol_row[:n_molecules].reshape(n_molecules, 1)
    force = force_t[:d_real, :N].T                                  # (N, 3) glue
    return e_mol, force


class CalculateProperties:
    """JAX/Pallas re-implementation of modelforge CalculateProperties.forward.

    The user-supplied torch model + autograd is replaced by a fixed synthetic
    per-atom MLP whose force is computed analytically inside the same fused
    kernel (no Python-attribute state between helper calls).
    """

    def __init__(self, requested_properties):
        self.requested_properties = requested_properties
        self.include_force = 'per_atom_force' in requested_properties

    def _get_energies(self, batch, predictions):
        e_true = batch['E'].astype(jnp.float32)                     # (M, 1)
        e_pred = predictions['per_molecule_energy']                 # (M, 1)
        assert e_true.shape == e_pred.shape, (
            f"Shapes of true and predicted energies do not match: "
            f"{e_true.shape} != {e_pred.shape}")
        return {'per_molecule_energy_true': e_true,
                'per_molecule_energy_predict': e_pred}

    def _get_forces(self, batch, predictions, train_mode):
        f_true = batch['F'].astype(jnp.float32)                     # (N, 3)
        if f_true.size < 1:
            raise RuntimeError('No force can be calculated.')
        return {'per_atom_force_true': f_true,
                'per_atom_force_predict': predictions['per_atom_force']}

    def forward(self, batch, params, train_mode=False):
        e_pred, f_pred = predict_energy_and_forces(
            batch['positions'], params['w1'], params['b1'], params['w2'],
            batch['mol_idx'], batch['n_molecules'])
        predictions = {'per_molecule_energy': e_pred,
                       'per_atom_force': f_pred}
        energies = self._get_energies(batch, predictions)
        forces = (self._get_forces(batch, predictions, train_mode)
                  if self.include_force else {})
        return {**energies, **forces}


def _reference(pos, w1, b1, w2, mol_idx, n_mol):
    """Pure-JAX reference (energy forward + force via jax.grad)."""
    def total_energy(p):
        z = p @ w1 + b1[None, :]
        return jnp.sum(jnp.tanh(z) @ w2)

    z = pos @ w1 + b1[None, :]
    e_atom = jnp.tanh(z) @ w2                                       # (N,)
    e_mol = jax.ops.segment_sum(e_atom, mol_idx,
                                num_segments=n_mol).reshape(n_mol, 1)
    force = -jax.grad(total_energy)(pos)
    return e_mol, force


if __name__ == "__main__":
    key = jax.random.PRNGKey(0)
    k1, k2, k3, k4, k5, k6 = jax.random.split(key, 6)

    # small synthetic batch: 600 atoms (-> 2 atom tiles of 512, exercising the
    # parallel grid + per-tile partial-energy reduction), 4 molecules,
    # 3D coords, hidden width 32.
    N, D_REAL, H, M = 600, 3, 32, 4

    positions = jax.random.normal(k1, (N, D_REAL), jnp.float32)
    w1 = 0.1 * jax.random.normal(k2, (D_REAL, H), jnp.float32)
    b1 = 0.1 * jax.random.normal(k3, (H,), jnp.float32)
    w2 = 0.1 * jax.random.normal(k4, (H,), jnp.float32)
    params = {'w1': w1, 'b1': b1, 'w2': w2}

    atoms_per_mol = (N + M - 1) // M
    mol_idx = (jnp.arange(N) // atoms_per_mol).astype(jnp.int32)

    # "true" labels from the dataset (synthetic)
    E_true = jax.random.normal(k5, (M, 1), jnp.float32)
    F_true = jax.random.normal(k6, (N, D_REAL), jnp.float32)

    batch = {'positions': positions, 'mol_idx': mol_idx, 'n_molecules': M,
             'E': E_true, 'F': F_true}

    calc = CalculateProperties(
        requested_properties=['per_molecule_energy', 'per_atom_force'])

    out = calc.forward(batch, params, train_mode=False)
    jax.block_until_ready(out)

    # validate against a pure-JAX reference (autograd forces)
    e_ref, f_ref = _reference(positions, w1, b1, w2, mol_idx, M)
    assert jnp.allclose(out['per_molecule_energy_predict'], e_ref,
                        atol=1e-4, rtol=1e-4), "energy mismatch"
    assert jnp.allclose(out['per_atom_force_predict'], f_ref,
                        atol=1e-4, rtol=1e-4), "force mismatch"
    assert out['per_molecule_energy_true'].shape == \
        out['per_molecule_energy_predict'].shape
    assert out['per_atom_force_true'].shape == \
        out['per_atom_force_predict'].shape

    print("KERNEL_OK")
</pallas_src>

<mosaic_0001>
module attributes {stable_mosaic.version = 11 : i64} {
  func.func @_energy_force_kernel(%arg0: i32, %arg1: memref<8x512xf32, #tpu.memory_space<vmem>>, %arg2: memref<8x32xf32, #tpu.memory_space<vmem>>, %arg3: memref<32x2xf32, #tpu.memory_space<vmem>>, %arg4: memref<512x1xi32, #tpu.memory_space<vmem>>, %arg5: memref<1x1x128xf32, #tpu.memory_space<vmem>>, %arg6: memref<8x512xf32, #tpu.memory_space<vmem>>) attributes {dimension_semantics = [#tpu.dimension_semantics<parallel>], iteration_bounds = array<i64: 2>, scalar_prefetch = 0 : i64, scratch_operands = 0 : i64, tpu.core_type = #tpu.core_type<tc>, window_params = [{transform_indices = @transform_0, window_bounds = array<i64: 8, 512>}, {pipeline_mode = #tpu.pipeline_mode<synchronous>, transform_indices = @transform_1, window_bounds = array<i64: 8, 32>}, {pipeline_mode = #tpu.pipeline_mode<synchronous>, transform_indices = @transform_2, window_bounds = array<i64: 32, 2>}, {transform_indices = @transform_3, window_bounds = array<i64: 512, 1>}, {transform_indices = @transform_4, window_bounds = array<i64: 1, 1, 128>}, {transform_indices = @transform_5, window_bounds = array<i64: 8, 512>}]} {
    %c0 = arith.constant 0 : index
    %c0_0 = arith.constant 0 : index
    %0 = vector.load %arg1[%c0, %c0_0] : memref<8x512xf32, #tpu.memory_space<vmem>>, vector<8x512xf32>
    %c0_1 = arith.constant 0 : index
    %c0_2 = arith.constant 0 : index
    %1 = vector.load %arg2[%c0_1, %c0_2] : memref<8x32xf32, #tpu.memory_space<vmem>>, vector<8x32xf32>
    %c0_3 = arith.constant 0 : index
    %c0_4 = arith.constant 0 : index
    %2 = vector.load %arg3[%c0_3, %c0_4] : memref<32x2xf32, #tpu.memory_space<vmem>>, vector<32x2xf32>
    %3 = vector.extract_strided_slice %2 {offsets = [0, 0], sizes = [32, 1], strides = [1, 1]} : vector<32x2xf32> to vector<32x1xf32>
    %4 = vector.extract_strided_slice %2 {offsets = [0, 1], sizes = [32, 1], strides = [1, 1]} : vector<32x2xf32> to vector<32x1xf32>
    %cst = arith.constant dense<0.000000e+00> : vector<32x512xf32>
    %5 = tpu.matmul %1, %0, %cst {dimension_numbers = #tpu.dot_dimension_numbers<[0], [0], [1], [1], [0, 1, 1, 1], [], []>} : vector<8x32xf32>, vector<8x512xf32>, vector<32x512xf32> -> vector<32x512xf32>
    %6 = vector.broadcast %3 : vector<32x1xf32> to vector<32x512xf32>
    %7 = arith.addf %5, %6 : vector<32x512xf32>
    %8 = math.tanh %7 : vector<32x512xf32>
    %c0_5 = arith.constant 0 : index
    %c0_6 = arith.constant 0 : index
    %9 = vector.load %arg4[%c0_5, %c0_6] : memref<512x1xi32, #tpu.memory_space<vmem>>, vector<512x1xi32>
    %10 = tpu.iota {dimensions = array<i32: 1>} : vector<512x128xi32>
    %11 = vector.broadcast %9 : vector<512x1xi32> to vector<512x128xi32>
    %12 = arith.cmpi eq, %10, %11 : vector<512x128xi32>
    %13 = arith.extui %12 : vector<512x128xi1> to vector<512x128xi32>
    %14 = arith.sitofp %13 : vector<512x128xi32> to vector<512x128xf32>
    %cst_7 = arith.constant dense<0.000000e+00> : vector<32x128xf32>
    %15 = tpu.matmul %8, %14, %cst_7 {dimension_numbers = #tpu.dot_dimension_numbers<[1], [0], [0], [1], [0, 0, 1, 1], [], []>} : vector<32x512xf32>, vector<512x128xf32>, vector<32x128xf32> -> vector<32x128xf32>
    %16 = vector.broadcast %4 : vector<32x1xf32> to vector<32x128xf32>
    %17 = arith.mulf %16, %15 : vector<32x128xf32>
    %cst_8 = arith.constant dense<0.000000e+00> : vector<128xf32>
    %18 = vector.multi_reduction <add>, %17, %cst_8 [0] : vector<32x128xf32> to vector<128xf32>
    %19 = vector.shape_cast %18 : vector<128xf32> to vector<1x128xf32>
    %20 = vector.shape_cast %19 : vector<1x128xf32> to vector<1x1x128xf32>
    %c0_9 = arith.constant 0 : index
    %c0_10 = arith.constant 0 : index
    %c0_11 = arith.constant 0 : index
    %21 = vector.load %arg5[%c0_9, %c0_10, %c0_11] : memref<1x1x128xf32, #tpu.memory_space<vmem>>, vector<1x1x128xf32>
    tpu.vector_store %arg5[%c0_9, %c0_10, %c0_11], %20 {strides = array<i32>} : memref<1x1x128xf32, #tpu.memory_space<vmem>>, vector<1x1x128xf32>,
    %22 = arith.mulf %8, %8 : vector<32x512xf32>
    %cst_12 = arith.constant 1.000000e+00 : f32
    %23 = vector.broadcast %cst_12 : f32 to vector<32x512xf32>
    %24 = arith.subf %23, %22 : vector<32x512xf32>
    %25 = vector.broadcast %4 : vector<32x1xf32> to vector<32x512xf32>
    %26 = arith.mulf %24, %25 : vector<32x512xf32>
    %cst_13 = arith.constant dense<0.000000e+00> : vector<8x512xf32>
    %27 = tpu.matmul %1, %26, %cst_13 {dimension_numbers = #tpu.dot_dimension_numbers<[1], [0], [0], [1], [0, 0, 1, 1], [], []>} : vector<8x32xf32>, vector<32x512xf32>, vector<8x512xf32> -> vector<8x512xf32>
    %cst_14 = arith.constant 0.000000e+00 : f32
    %28 = vector.broadcast %cst_14 : f32 to vector<8x512xf32>
    %29 = arith.subf %28, %27 : vector<8x512xf32>
    %c0_15 = arith.constant 0 : index
    %c0_16 = arith.constant 0 : index
    %30 = vector.load %arg6[%c0_15, %c0_16] : memref<8x512xf32, #tpu.memory_space<vmem>>, vector<8x512xf32>
    tpu.vector_store %arg6[%c0_15, %c0_16], %29 {strides = array<i32>} : memref<8x512xf32, #tpu.memory_space<vmem>>, vector<8x512xf32>,
    return
  }
  func.func @transform_0(%arg0: i32) -> (i32, i32) {
    %c0_i32 = arith.constant 0 : i32
    %c0_i32_0 = arith.constant 0 : i32
    return %c0_i32, %arg0 : i32, i32
  }
  func.func @transform_1(%arg0: i32) -> (i32, i32) {
    %c0_i32 = arith.constant 0 : i32
    %c0_i32_0 = arith.constant 0 : i32
    %c0_i32_1 = arith.constant 0 : i32
    return %c0_i32, %c0_i32_0 : i32, i32
  }
  func.func @transform_2(%arg0: i32) -> (i32, i32) {
    %c0_i32 = arith.constant 0 : i32
    %c0_i32_0 = arith.constant 0 : i32
    %c0_i32_1 = arith.constant 0 : i32
    return %c0_i32, %c0_i32_0 : i32, i32
  }
  func.func @transform_3(%arg0: i32) -> (i32, i32) {
    %c0_i32 = arith.constant 0 : i32
    %c0_i32_0 = arith.constant 0 : i32
    return %arg0, %c0_i32 : i32, i32
  }
  func.func @transform_4(%arg0: i32) -> (i32, i32, i32) {
    %c0_i32 = arith.constant 0 : i32
    %c0_i32_0 = arith.constant 0 : i32
    %c0_i32_1 = arith.constant 0 : i32
    return %arg0, %c0_i32, %c0_i32_0 : i32, i32, i32
  }
  func.func @transform_5(%arg0: i32) -> (i32, i32) {
    %c0_i32 = arith.constant 0 : i32
    %c0_i32_0 = arith.constant 0 : i32
    return %c0_i32, %arg0 : i32, i32
  }
}

</mosaic_0001>

<bundles_post_ra>
// kernel: tpu_custom_call.1
= control target key start
LH: loop header
LB: loop body
LE: loop exit
PB: predicated region body
PF: predicated region fallthrough
CT: control target
= control target key end

     0   :  { %11 = vsyncpa [#allocation3], 0  ;;  %s2443_s0 = inlined_call_operand.vmem [shape: f32[8,1024], index: 0, kind: input, shape index: {}]   ;;  %s2444_s1 = inlined_call_operand.vmem [shape: f32[8,32], index: 1, kind: input, shape index: {}]   ;;  %s2445_s2 = inlined_call_operand.vmem [shape: f32[32,2], index: 2, kind: input, shape index: {}]   ;;  %s2446_s3 = inlined_call_operand.vmem [shape: s32[1024,1], index: 3, kind: input, shape index: {}]   ;;  %s2447_s4 = inlined_call_operand.hbm [shape: f32[2,1,128], index: 4, kind: output, shape index: {0}]   ;;  %s2448_s5 = inlined_call_operand.hbm [shape: f32[8,1024], index: 5, kind: output, shape index: {1}]  }
   0x1   :  { %13 = vsyncpa [#allocation3 + $0x1], 0 }
   0x2   :  { %14 = vsyncpa [#allocation5], 0 }
   0x3   :  { %16 = vsyncpa [#allocation5 + $0x1], 0  ;;  %s2048_s18 = smov 0   ;;  %s2050_s19 = smov 0  }
   0x4   :  { %s2052_s20 = smov 0   ;;  %s2054_s21 = smov 0  }
   0x5 LB: > { %s2069_s22 = sadd.s32 4294967295, %s2010_s21   ;;  %s1509_s23 = sadd.s32 4294967294, %s2010_s21   ;;  %s2010_s21 = sphi %s2054_s21, %s2454_s21   ;;  %s2006_s20 = sphi %s2052_s20, %s2453_s20   ;;  %s2002_s19 = sphi %s2050_s19, %s2452_s19   ;;  %s1998_s18 = sphi %s2048_s18, %s2451_s18  }
   0x6   : > { %s2073_s24 = sadd.s32 1, %s2010_s21   ;;  %s123_s25 = sadd.s32 1, %s2006_s20 }
   0x7   : > { %s120_s26 = ssub.s32 %s2010_s21, %s2073_s24  ;;  %p133_p0 = scmp.ne.s32.totalorder %s2006_s20, %s2002_s19 }
   0x8   : > { %p121_p1 = scmp.eq.s32.totalorder %s120_s26, 0  ;;  %p134_p2 = scmp.eq.s32.totalorder %s2069_s22, 1 }
   0x9   : > { %p139_p3 = scmp.ne.s32.totalorder %s2002_s19, %s1998_s18  ;;  %p140_p4 = scmp.eq.s32.totalorder %s1509_s23, 1 }
   0xa   : > { %s2084_s27 = scalar_select %p121_p1, %s2006_s20, %s123_s25  }
   0xb   : > { %p2086_p5 = por %p134_p2, %p133_p0  ;;  %p2090_p6 = por %p140_p4, %p139_p3 }
   0xc   : > { %p1512_p7 = scmp.ge.s32.totalorder %s2010_s21, 1  ;;  %p208_p8 = scmp.lt.s32.totalorder %s2010_s21, 3 }
   0xe   : > { %p209_p9 = pnand %p1512_p7, %p208_p8 }
   0xf   : > { %v262_v0 = vld [vmem:[%s2444_s1] sm:$0xff] (!%p209_p9)  ;;  %s1516_s7 = sshll.u32 (!%p209_p9), %s2069_s22, 6  ;;  %v2012_v1 = vmov (!%p209_p9), 0   ;;  %v2013_v2 = vmov (!%p209_p9), 0.0   ;;  %s1514_s12 = sshll.u32 (!%p209_p9), %s2069_s22, 2  ;;  %vm319_vm0 = vcmask (!%p209_p9), 64512   ;;  %v590_v63 = vlaneseq (!%p209_p9) }
  0x10   : > { %212 = sbr.rel (%p209_p9) target bundleno = 652 (0x28c), region = 36  ;;  %287 = vxpose.xlu0.b32.start.end [1/1] (short) (narrow) (!%p209_p9), %v262_v0, 32  ;;  %1880 = vset.pattern.permute.xlu1 (!%p209_p9), %v2012_v1  ;;  %p252_p10 = scmp.lt.s32.totalorder (!%p209_p9), %s1516_s7, 127  ;;  %v2152_v45 = vld [vmem:[%s2445_s2] sm:$0xff] (!%p209_p9)  ;;  %v2170_v59 = vld [vmem:[%s2445_s2 + $0x8] sm:$0xff] (!%p209_p9) }
  0x11   : > { %396 = vmatprep.mubr.f32.mxu0 (!%p209_p9), %v2013_v2  ;;  %485 = vmatprep.mubr.f32.mxu1 (!%p209_p9), %v2013_v2  ;;  %p246_p11 = scmp.lt.s32.totalorder (!%p209_p9), %s1514_s12, 7  ;;  %s2016_s30 = smov (!%p209_p9), [#allocation4]  }
  0x12   : > { %s1920_s6 = sshll.u32 (!%p209_p9), %s2016_s30, 4  ;;  %s1921_s6 = int_to_ptr.vmem [resolvable:$false] %s1920_s6 }
  0x17   : > { %s2456_s7 = smov (!%p252_p10, %s1516_s7), 127  ;;  %s2458_s12 = smov (!%p246_p11, %s1514_s12), 7 }
  0x18   : > { %s1517_s8 = sshll.u32 %s2456_s7, 3  ;;  %s1515_s13 = sshll.u32 %s2458_s12, 3 }
  0x19   : > { %s2105_s11 = scalar_lea.vmem %s2446_s3, %s1517_s8  ;;  %s249_s16 = scalar_lea.vmem %s2443_s0, %s1515_s13 }
  0x1a   : > { %v543_v3 = vld [vmem:[%s2105_s11 + $0x88] sm:$0xff]  ;;  %v574_v4 = vld [vmem:[%s2105_s11 + $0x180] sm:$0xff]  ;;  %v261_v9 = vld [vmem:[%s249_s16 + $0x18] sm:$0xff]  ;;  %s1662_s13 = sshll.u32 %s2069_s22, 9  ;;  %s1922_s7 = scalar_lea.vmem %s1921_s6, 1024 }
  0x1b   : > { %644 = vperm.xlu1 %1880, %v543_v3   ;;  %v575_v5 = vld [vmem:[%s2105_s11 + $0x188] sm:$0xff]  ;;  %v526_v6 = vld [vmem:[%s2105_s11] sm:$0xff]  ;;  %v260_v11 = vld [vmem:[%s249_s16 + $0x10] sm:$0xff]  ;;  %421 = vmatprep.subr.mxu1 %v261_v9  ;;  %s2369_s23 = scalar_lea.hbm %s2448_s5, %s1662_s13 }
  0x1c   : > { %v527_v7 = vld [vmem:[%s2105_s11 + $0x8] sm:$0xff]  ;;  %v258_v10 = vld [vmem:[%s249_s16] sm:$0xff]  ;;  %422 = vmatpush1.msra.mxu1 %v260_v11  ;;  %v544_v14 = vld [vmem:[%s2105_s11 + $0x90] sm:$0xff] }
  0x1d   : > { %v259_v8 = vld [vmem:[%s249_s16 + $0x8] sm:$0xff]  ;;  %v558_v12 = vld [vmem:[%s2105_s11 + $0x100] sm:$0xff]  ;;  %v545_v15 = vld [vmem:[%s2105_s11 + $0x98] sm:$0xff] }
  0x1e   : > { %332 = vmatprep.subr.mxu0 %v259_v8  ;;  %v559_v13 = vld [vmem:[%s2105_s11 + $0x108] sm:$0xff]  ;;  %v576_v16 = vld [vmem:[%s2105_s11 + $0x190] sm:$0xff]  ;;  %v577_v17 = vld [vmem:[%s2105_s11 + $0x198] sm:$0xff] }
  0x1f   : > { %737 = vperm.xlu1 %1880, %v574_v4   ;;  %333 = vmatpush1.msra.mxu0 %v258_v10  ;;  %v528_v18 = vld [vmem:[%s2105_s11 + $0x10] sm:$0xff]  ;;  %v542_v19 = vld [vmem:[%s2105_s11 + $0x80] sm:$0xff]  ;;  %v529_v20 = vld [vmem:[%s2105_s11 + $0x18] sm:$0xff] }
  0x20   : > { %v546_v21 = vld [vmem:[%s2105_s11 + $0xa0] sm:$0xff]  ;;  %v560_v22 = vld [vmem:[%s2105_s11 + $0x110] sm:$0xff]  ;;  %v561_v24 = vld [vmem:[%s2105_s11 + $0x118] sm:$0xff] }
  0x21   : > { %v578_v23 = vld [vmem:[%s2105_s11 + $0x1a0] sm:$0xff]  ;;  %v547_v26 = vld [vmem:[%s2105_s11 + $0xa8] sm:$0xff]  ;;  %v548_v29 = vld [vmem:[%s2105_s11 + $0xb0] sm:$0xff] }
  0x22   : > { %v530_v25 = vld [vmem:[%s2105_s11 + $0x20] sm:$0xff]  ;;  %v579_v28 = vld [vmem:[%s2105_s11 + $0x1a8] sm:$0xff]  ;;  %v580_v31 = vld [vmem:[%s2105_s11 + $0x1b0] sm:$0xff] }
  0x23   : > { %740 = vperm.xlu1 %1880, %v575_v5   ;;  %v562_v27 = vld [vmem:[%s2105_s11 + $0x120] sm:$0xff]  ;;  %v531_v30 = vld [vmem:[%s2105_s11 + $0x28] sm:$0xff]  ;;  %v532_v33 = vld [vmem:[%s2105_s11 + $0x30] sm:$0xff]  ;;  %v2187_v5 = vand.u32 127, %v590_v63 }
  0x24   : > { %v563_v32 = vld [vmem:[%s2105_s11 + $0x128] sm:$0xff]  ;;  %v549_v34 = vld [vmem:[%s2105_s11 + $0xb8] sm:$0xff]  ;;  %v564_v35 = vld [vmem:[%s2105_s11 + $0x130] sm:$0xff] }
  0x25   : > { %v581_v36 = vld [vmem:[%s2105_s11 + $0x1b8] sm:$0xff]  ;;  %v550_v37 = vld [vmem:[%s2105_s11 + $0xc0] sm:$0xff]  ;;  %v551_v42 = vld [vmem:[%s2105_s11 + $0xc8] sm:$0xff] }
  0x26   : > { %v533_v38 = vld [vmem:[%s2105_s11 + $0x38] sm:$0xff]  ;;  %v582_v39 = vld [vmem:[%s2105_s11 + $0x1c0] sm:$0xff]  ;;  %v583_v44 = vld [vmem:[%s2105_s11 + $0x1c8] sm:$0xff] }
  0x27   : > { %593 = vperm.xlu1 %1880, %v526_v6   ;;  %v565_v40 = vld [vmem:[%s2105_s11 + $0x138] sm:$0xff]  ;;  %v534_v41 = vld [vmem:[%s2105_s11 + $0x40] sm:$0xff]  ;;  %v535_v46 = vld [vmem:[%s2105_s11 + $0x48] sm:$0xff] }
  0x28   : > { %v566_v43 = vld [vmem:[%s2105_s11 + $0x140] sm:$0xff]  ;;  %v553_v47 = vld [vmem:[%s2105_s11 + $0xd8] sm:$0xff]  ;;  %v567_v48 = vld [vmem:[%s2105_s11 + $0x148] sm:$0xff] }
  0x29   : > { %v585_v49 = vld [vmem:[%s2105_s11 + $0x1d8] sm:$0xff]  ;;  %v552_v50 = vld [vmem:[%s2105_s11 + $0xd0] sm:$0xff]  ;;  %v554_v55 = vld [vmem:[%s2105_s11 + $0xe0] sm:$0xff] }
  0x2a   : > { %v537_v51 = vld [vmem:[%s2105_s11 + $0x58] sm:$0xff]  ;;  %v584_v52 = vld [vmem:[%s2105_s11 + $0x1d0] sm:$0xff]  ;;  %v586_v57 = vld [vmem:[%s2105_s11 + $0x1e0] sm:$0xff] }
  0x2b   : > { %596 = vperm.xlu1 %1880, %v527_v7   ;;  %v569_v53 = vld [vmem:[%s2105_s11 + $0x158] sm:$0xff]  ;;  %v536_v54 = vld [vmem:[%s2105_s11 + $0x50] sm:$0xff]  ;;  %v538_v60 = vld [vmem:[%s2105_s11 + $0x60] sm:$0xff] }
  0x2c   : > { %v568_v56 = vld [vmem:[%s2105_s11 + $0x150] sm:$0xff]  ;;  %v555_v62 = vld [vmem:[%s2105_s11 + $0xe8] sm:$0xff]  ;;  %v557_v11 = vld [vmem:[%s2105_s11 + $0xf8] sm:$0xff] }
  0x2d   : > { %v587_v4 = vld [vmem:[%s2105_s11 + $0x1e8] sm:$0xff]  ;;  %v265_v7 = vld [vmem:[%s2445_s2 + $0x10] sm:$0xff] }
  0x2e   : > { %v539_v9 = vld [vmem:[%s2105_s11 + $0x68] sm:$0xff] }
  0x2f   : > { %689 = vperm.xlu1 %1880, %v558_v12   ;;  %v571_v12 = vld [vmem:[%s2105_s11 + $0x168] sm:$0xff] }
  0x33   : > { %692 = vperm.xlu1 %1880, %v559_v13   ;;  %v2014_v13 = vmov 1.0|1.0  }
  0x37   : > { %647 = vperm.xlu1 %1880, %v544_v14  }
  0x39   : > { %1879 = vset.pattern.permute.xlu0 %v2012_v1  ;;  %v570_v1 = vld [vmem:[%s2105_s11 + $0x160] sm:$0xff] }
  0x3b   : > { %650 = vperm.xlu1 %1880, %v545_v15   ;;  %v589_v15 = vld [vmem:[%s2105_s11 + $0x1f8] sm:$0xff] }
  0x3f   : > { %743 = vperm.xlu1 %1880, %v576_v16   ;;  %v556_v16 = vld [vmem:[%s2105_s11 + $0xf0] sm:$0xff] }
  0x43   : > { %746 = vperm.xlu1 %1880, %v577_v17  }
  0x45   : > { %641 = vperm.xlu0 %1879, %v542_v19   ;;  %v588_v19 = vld [vmem:[%s2105_s11 + $0x1f0] sm:$0xff] }
  0x47   : > { %599 = vperm.xlu1 %1880, %v528_v18   ;;  %v541_v18 = vld [vmem:[%s2105_s11 + $0x78] sm:$0xff] }
  0x49   : > { %653 = vperm.xlu0 %1879, %v546_v21   ;;  %v573_v21 = vld [vmem:[%s2105_s11 + $0x178] sm:$0xff] }
  0x4b   : > { %602 = vperm.xlu1 %1880, %v529_v20  }
  0x4d   : > { %749 = vperm.xlu0 %1879, %v578_v23  }
  0x4f   : > { %695 = vperm.xlu1 %1880, %v560_v22   ;;  %v540_v22 = vld [vmem:[%s2105_s11 + $0x70] sm:$0xff] }
  0x51   : > { %605 = vperm.xlu0 %1879, %v530_v25   ;;  %v2015_v25 = vmov 1  }
  0x53   : > { %698 = vperm.xlu1 %1880, %v561_v24   ;;  %v572_v24 = vld [vmem:[%s2105_s11 + $0x170] sm:$0xff]  ;;  %s2360_s11 = sand.u32 1, %s2002_s19  }
  0x54   : > { %s1513_s12 = sshll.u32 %s2360_s11, 5  ;;  %s1383_s25 = scalar_lea.sflag [#allocation5], %s2360_s11 }
  0x55   : > { %701 = vperm.xlu0 %1879, %v562_v27   ;;  %v266_v27 = vld [vmem:[%s2445_s2 + $0x18] sm:$0xff]  ;;  %s244_s14 = scalar_lea.vmem [#allocation4], %s1513_s12 }
  0x56   : > { %s1410_s15 = sshll.u32 %s244_s14, 4  ;;  %s2371_s15 = int_to_ptr.vmem [resolvable:$true] %s1410_s15 }
  0x57   : > { %656 = vperm.xlu1 %1880, %v547_v26   ;;  %s1916_s26 = scalar_lea.vmem %s2371_s15, 512  ;;  %p1923_p1 = scmp.lt.s32.totalorder %s2371_s15, %s1921_s6 }
  0x58   : > { %p1917_p12 = scmp.ne.s32.totalorder %s2371_s15, %s1916_s26  ;;  %p1924_p2 = scmp.lt.s32.totalorder %s1922_s7, %s1916_s26 }
  0x59   : > { %659 = vperm.xlu0 %1879, %v548_v29  }
  0x5a   : > { %p1918_p13 = pnand %p1917_p12, %p2086_p5  ;;  %p1925_p3 = por %p1924_p2, %p1923_p1 }
  0x5b   : > { %752 = vperm.xlu1 %1880, %v579_v28  }
  0x5c   : > { %p1919_p0 = pneg %p1918_p13 }
  0x5d   : > { %755 = vperm.xlu0 %1879, %v580_v31  }
  0x5e   : > { %p1926_p4 = pnand %p1925_p3, %p1919_p0 }
  0x5f   : > { %608 = vperm.xlu1 %1880, %v531_v30  }
  0x61   : > { %611 = vperm.xlu0 %1879, %v532_v33  }
  0x63   : > { %704 = vperm.xlu1 %1880, %v563_v32  }
  0x65   : > { %707 = vperm.xlu0 %1879, %v564_v35  }
  0x67   : > { %662 = vperm.xlu1 %1880, %v549_v34  }
  0x69   : > { %665 = vperm.xlu0 %1879, %v550_v37  }
  0x6b   : > { %758 = vperm.xlu1 %1880, %v581_v36  }
  0x6d   : > { %761 = vperm.xlu0 %1879, %v582_v39  }
  0x6f   : > { %614 = vperm.xlu1 %1880, %v533_v38  }
  0x71   : > { %617 = vperm.xlu0 %1879, %v534_v41  }
  0x73   : > { %710 = vperm.xlu1 %1880, %v565_v40  }
  0x75   : > { %713 = vperm.xlu0 %1879, %v566_v43  }
  0x77   : > { %668 = vperm.xlu1 %1880, %v551_v42  }
  0x79   : > { %269 = vperm.xlu0 %1879, %v2152_v45  }
  0x7b   : > { %764 = vperm.xlu1 %1880, %v583_v44  }
  0x7d   : > { %674 = vperm.xlu0 %1879, %v553_v47  }
  0x7f   : > { %620 = vperm.xlu1 %1880, %v535_v46  }
  0x81   : > { %770 = vperm.xlu0 %1879, %v585_v49  }
  0x83   : > { %716 = vperm.xlu1 %1880, %v567_v48  }
  0x85   : > { %626 = vperm.xlu0 %1879, %v537_v51  }
  0x87   : > { %671 = vperm.xlu1 %1880, %v552_v50  }
  0x89   : > { %722 = vperm.xlu0 %1879, %v569_v53  }
  0x8b   : > { %767 = vperm.xlu1 %1880, %v584_v52  }
  0x8d   : > { %677 = vperm.xlu0 %1879, %v554_v55  }
  0x8f   : > { %623 = vperm.xlu1 %1880, %v536_v54  }
  0x90   : > { %v303_v58 = vpop.trf.xlu0 }
  0x91   : > { %773 = vperm.xlu0 %1879, %v586_v57   ;;  %1518 = vmatmul.mubr.msk.f32.vlgmr.msra.gmra.mrb[0].mxu0 %vm319_vm0, %v303_v58 }
  0x92   : > { %1522 = vmatmul.mubr.msk.f32.vlgmr.msra.gmra.mrb[0].mxu1 %vm319_vm0, %v303_v58  ;;  %402 = vmatprep.mubr.f32.mxu0 %v2013_v2 }
  0x93   : > { %719 = vperm.xlu1 %1880, %v568_v56   ;;  %491 = vmatprep.mubr.f32.mxu1 %v2013_v2 }
  0x94   : > { %v304_v61 = vpop.trf.xlu0 }
  0x95   : > { %629 = vperm.xlu0 %1879, %v538_v60   ;;  %1519 = vmatmul.mubr.msk.f32.gmra.mrb[2].mxu0 %vm319_vm0, %v304_v61 }
  0x96   : > { %1523 = vmatmul.mubr.msk.f32.gmra.mrb[2].mxu1 %vm319_vm0, %v304_v61  ;;  %408 = vmatprep.mubr.f32.mxu0 %v2013_v2 }
  0x97   : > { %274 = vperm.xlu1 %1880, %v2170_v59   ;;  %497 = vmatprep.mubr.f32.mxu1 %v2013_v2 }
  0x98   : > { %v305_v3 = vpop.trf.xlu0 }
  0x99   : > { %725 = vperm.xlu0 %1879, %v570_v1   ;;  %1520 = vmatmul.mubr.msk.f32.gmra.mrb[4].mxu0 %vm319_vm0, %v305_v3 }
  0x9a   : > { %v2181_v0 = vpop.permute.xlu1 %644  ;;  %1524 = vmatmul.mubr.msk.f32.gmra.mrb[4].mxu1 %vm319_vm0, %v305_v3  ;;  %414 = vmatprep.mubr.f32.mxu0 %v2013_v2 }
  0x9b   : > { %680 = vperm.xlu1 %1880, %v555_v62   ;;  %503 = vmatprep.mubr.f32.mxu1 %v2013_v2  ;;  %vm801_vm14 = vcmp.eq.s32.totalorder %v2187_v5, %v2181_v0 }
  0x9c   : > { %v306_v8 = vpop.trf.xlu0 }
  0x9d   : > { %279 = vperm.xlu0 %1879, %v265_v7   ;;  %1521 = vmatmul.mubr.msk.f32.gmra.mrb[6].mxu0 %vm319_vm0, %v306_v8 }
  0x9e   : > { %v738_v6 = vpop.permute.xlu1 %737  ;;  %1525 = vmatmul.mubr.msk.f32.gmra.mrb[6].mxu1 %vm319_vm0, %v306_v8 }
  0x9f   : > { %776 = vperm.xlu1 %1880, %v587_v4   ;;  %vm832_vm1 = vcmp.eq.s32.totalorder %v2187_v5, %v738_v6 }
  0xa1   : > { %686 = vperm.xlu0 %1879, %v557_v11  }
  0xa2   : > { %v741_v10 = vpop.permute.xlu1 %740 }
  0xa3   : > { %vm833_vm2 = vcmp.eq.s32.totalorder %v2187_v5, %v741_v10  ;;  %632 = vperm.xlu1 %1880, %v539_v9  }
  0xa4   : > { %vm1783_vm3 = vmpackc.low %vm833_vm2, %vm832_vm1 }
  0xa5   : > { %1784 = vmatprep.subr.msk.bf16.mxu1 %vm1783_vm3, %v2014_v13  ;;  %782 = vperm.xlu0 %1879, %v589_v15  }
  0xa6   : > { %v594_v14 = vpop.permute.xlu1 %593 }
  0xa7   : > { %728 = vperm.xlu1 %1880, %v571_v12   ;;  %vm784_vm10 = vcmp.eq.s32.totalorder %v2187_v5, %v594_v14 }
  0xa9   : > { %638 = vperm.xlu0 %1879, %v541_v18  }
  0xaa   : > { %v597_v17 = vpop.permute.xlu1 %596 }
  0xab   : > { %683 = vperm.xlu1 %1880, %v556_v16   ;;  %vm785_vm11 = vcmp.eq.s32.totalorder %v2187_v5, %v597_v17 }
  0xac   : > { %vm1753_vm15 = vmpackc.low %vm785_vm11, %vm784_vm10 }
  0xad   : > { %734 = vperm.xlu0 %1879, %v573_v21  }
  0xae   : > { %v690_v20 = vpop.permute.xlu1 %689 }
  0xaf   : > { %779 = vperm.xlu1 %1880, %v588_v19   ;;  %vm816_vm4 = vcmp.eq.s32.totalorder %v2187_v5, %v690_v20 }
  0xb1   : > { %1881 = vset.pattern.permute.xlu0 %v2015_v25 }
  0xb2   : > { %v693_v23 = vpop.permute.xlu1 %692  ;;  %1147 = vperm.xlu0 %1881, %v2152_v45  }
  0xb3   : > { %vm817_vm5 = vcmp.eq.s32.totalorder %v2187_v5, %v693_v23  ;;  %635 = vperm.xlu1 %1880, %v540_v22  }
  0xb4   : > { %vm1785_vm6 = vmpackc.low %vm817_vm5, %vm816_vm4 }
  0xb5   : > { %1786 = vmatpush3.bf16.msk.msra.mxu1 %vm1785_vm6, %v2014_v13 }
  0xb6   : > { %v648_v26 = vpop.permute.xlu1 %647  ;;  %1159 = vperm.xlu0 %1881, %v266_v27  }
  0xb7   : > { %731 = vperm.xlu1 %1880, %v572_v24   ;;  %vm802_vm12 = vcmp.eq.s32.totalorder %v2187_v5, %v648_v26 }
  0xba   : > { %v651_v28 = vpop.permute.xlu1 %650 }
  0xbb   : > { %284 = vperm.xlu1 %1880, %v266_v27   ;;  %vm803_vm13 = vcmp.eq.s32.totalorder %v2187_v5, %v651_v28 }
  0xbc   : > { %vm1755_vm0 = vmpackc.low %vm803_vm13, %vm802_vm12 }
  0xbe   : > { %v744_v29 = vpop.permute.xlu1 %743 }
  0xbf   : > { %1882 = vset.pattern.permute.xlu1 %v2015_v25  ;;  %vm834_vm7 = vcmp.eq.s32.totalorder %v2187_v5, %v744_v29 }
  0xc0   : > { %1151 = vperm.xlu1 %1882, %v2170_v59  }
  0xc2   : > { %v747_v30 = vpop.permute.xlu1 %746 }
  0xc3   : > { %vm835_vm8 = vcmp.eq.s32.totalorder %v2187_v5, %v747_v30 }
  0xc4   : > { %vm1787_vm9 = vmpackc.low %vm835_vm8, %vm834_vm7  ;;  %1155 = vperm.xlu1 %1882, %v265_v7   ;;  %v642_v32 = vpop.permute.xlu0 %641 }
  0xc5   : > { %1788 = vmatprep.subr.msk.bf16.mxu1 %vm1787_vm9, %v2014_v13  ;;  %vm800_vm1 = vcmp.eq.s32.totalorder %v2187_v5, %v642_v32 }
  0xc6   : > { %v600_v31 = vpop.permute.xlu1 %599  ;;  %vm1751_vm3 = vmpackc.low %vm801_vm14, %vm800_vm1 }
  0xc7   : > { %vm786_vm2 = vcmp.eq.s32.totalorder %v2187_v5, %v600_v31  ;;  %1752 = vmatprep.subr.msk.bf16.mxu0 %vm1751_vm3, %v2014_v13 }
  0xc8   : > { %v654_v34 = vpop.permute.xlu0 %653  ;;  %1754 = vmatpush3.bf16.msk.msra.mxu0 %vm1753_vm15, %v2014_v13 }
  0xc9   : > { %1756 = vmatprep.subr.msk.bf16.mxu0 %vm1755_vm0, %v2014_v13  ;;  %vm804_vm9 = vcmp.eq.s32.totalorder %v2187_v5, %v654_v34 }
  0xca   : > { %v603_v33 = vpop.permute.xlu1 %602 }
  0xcb   : > { %vm787_vm4 = vcmp.eq.s32.totalorder %v2187_v5, %v603_v33 }
  0xcc   : > { %vm1757_vm5 = vmpackc.low %vm787_vm4, %vm786_vm2  ;;  %v750_v36 = vpop.permute.xlu0 %749 }
  0xcd   : > { %1758 = vmatpush3.bf16.msk.msra.mxu0 %vm1757_vm5, %v2014_v13  ;;  %vm836_vm12 = vcmp.eq.s32.totalorder %v2187_v5, %v750_v36 }
  0xce   : > { %v696_v35 = vpop.permute.xlu1 %695 }
  0xcf   : > { %vm818_vm6 = vcmp.eq.s32.totalorder %v2187_v5, %v696_v35 }
  0xd0   : > { %v606_v38 = vpop.permute.xlu0 %605 }
  0xd1   : > { %vm788_vm15 = vcmp.eq.s32.totalorder %v2187_v5, %v606_v38 }
  0xd2   : > { %v699_v37 = vpop.permute.xlu1 %698 }
  0xd3   : > { %vm819_vm7 = vcmp.eq.s32.totalorder %v2187_v5, %v699_v37 }
  0xd4   : > { %vm1789_vm8 = vmpackc.low %vm819_vm7, %vm818_vm6  ;;  %v702_v40 = vpop.permute.xlu0 %701 }
  0xd5   : > { %1790 = vmatpush3.bf16.msk.msra.mxu1 %vm1789_vm8, %v2014_v13  ;;  %vm820_vm2 = vcmp.eq.s32.totalorder %v2187_v5, %v702_v40 }
  0xd6   : > { %v657_v39 = vpop.permute.xlu1 %656 }
  0xd7   : > { %vm805_vm10 = vcmp.eq.s32.totalorder %v2187_v5, %v657_v39 }
  0xd8   : > { %vm1759_vm11 = vmpackc.low %vm805_vm10, %vm804_vm9  ;;  %v660_v42 = vpop.permute.xlu0 %659 }
  0xd9   : > { %1760 = vmatprep.subr.msk.bf16.mxu0 %vm1759_vm11, %v2014_v13  ;;  %vm806_vm5 = vcmp.eq.s32.totalorder %v2187_v5, %v660_v42 }
  0xda   : > { %v753_v41 = vpop.permute.xlu1 %752 }
  0xdb   : > { %vm837_vm13 = vcmp.eq.s32.totalorder %v2187_v5, %v753_v41 }
  0xdc   : > { %vm1791_vm14 = vmpackc.low %vm837_vm13, %vm836_vm12  ;;  %v756_v44 = vpop.permute.xlu0 %755 }
  0xdd   : > { %1792 = vmatprep.subr.msk.bf16.mxu1 %vm1791_vm14, %v2014_v13  ;;  %vm838_vm8 = vcmp.eq.s32.totalorder %v2187_v5, %v756_v44 }
  0xde   : > { %v609_v43 = vpop.permute.xlu1 %608 }
  0xdf   : > { %vm789_vm0 = vcmp.eq.s32.totalorder %v2187_v5, %v609_v43 }
  0xe0   : > { %vm1761_vm1 = vmpackc.low %vm789_vm0, %vm788_vm15  ;;  %v612_v46 = vpop.permute.xlu0 %611 }
  0xe1   : > { %1762 = vmatpush3.bf16.msk.msra.mxu0 %vm1761_vm1, %v2014_v13  ;;  %vm790_vm11 = vcmp.eq.s32.totalorder %v2187_v5, %v612_v46 }
  0xe2   : > { %v705_v45 = vpop.permute.xlu1 %704 }
  0xe3   : > { %vm821_vm3 = vcmp.eq.s32.totalorder %v2187_v5, %v705_v45 }
  0xe4   : > { %vm1793_vm4 = vmpackc.low %vm821_vm3, %vm820_vm2  ;;  %v708_v48 = vpop.permute.xlu0 %707 }
  0xe5   : > { %1794 = vmatpush3.bf16.msk.msra.mxu1 %vm1793_vm4, %v2014_v13  ;;  %vm822_vm14 = vcmp.eq.s32.totalorder %v2187_v5, %v708_v48 }
  0xe6   : > { %v663_v47 = vpop.permute.xlu1 %662 }
  0xe7   : > { %vm807_vm6 = vcmp.eq.s32.totalorder %v2187_v5, %v663_v47 }
  0xe8   : > { %vm1763_vm7 = vmpackc.low %vm807_vm6, %vm806_vm5  ;;  %v666_v50 = vpop.permute.xlu0 %665 }
  0xe9   : > { %1764 = vmatprep.subr.msk.bf16.mxu0 %vm1763_vm7, %v2014_v13  ;;  %vm808_vm1 = vcmp.eq.s32.totalorder %v2187_v5, %v666_v50 }
  0xea   : > { %v759_v49 = vpop.permute.xlu1 %758 }
  0xeb   : > { %vm839_vm9 = vcmp.eq.s32.totalorder %v2187_v5, %v759_v49 }
  0xec   : > { %vm1795_vm10 = vmpackc.low %vm839_vm9, %vm838_vm8  ;;  %v762_v52 = vpop.permute.xlu0 %761 }
  0xed   : > { %1796 = vmatprep.subr.msk.bf16.mxu1 %vm1795_vm10, %v2014_v13  ;;  %vm840_vm4 = vcmp.eq.s32.totalorder %v2187_v5, %v762_v52 }
  0xee   : > { %v615_v51 = vpop.permute.xlu1 %614 }
  0xef   : > { %vm791_vm12 = vcmp.eq.s32.totalorder %v2187_v5, %v615_v51 }
  0xf0   : > { %vm1765_vm13 = vmpackc.low %vm791_vm12, %vm790_vm11  ;;  %v618_v54 = vpop.permute.xlu0 %617 }
  0xf1   : > { %1766 = vmatpush3.bf16.msk.msra.mxu0 %vm1765_vm13, %v2014_v13  ;;  %vm792_vm7 = vcmp.eq.s32.totalorder %v2187_v5, %v618_v54 }
  0xf2   : > { %v711_v53 = vpop.permute.xlu1 %710 }
  0xf3   : > { %vm823_vm15 = vcmp.eq.s32.totalorder %v2187_v5, %v711_v53 }
  0xf4   : > { %vm1797_vm0 = vmpackc.low %vm823_vm15, %vm822_vm14  ;;  %v714_v56 = vpop.permute.xlu0 %713 }
  0xf5   : > { %1798 = vmatpush3.bf16.msk.msra.mxu1 %vm1797_vm0, %v2014_v13  ;;  %vm824_vm10 = vcmp.eq.s32.totalorder %v2187_v5, %v714_v56 }
  0xf6   : > { %v669_v55 = vpop.permute.xlu1 %668 }
  0xf7   : > { %vm809_vm2 = vcmp.eq.s32.totalorder %v2187_v5, %v669_v55 }
  0xf8   : > { %vm1767_vm3 = vmpackc.low %vm809_vm2, %vm808_vm1  ;;  %v2267_v58 = vpop.permute.xlu0 %269 }
  0xf9   : > { %1768 = vmatprep.subr.msk.bf16.mxu0 %vm1767_vm3, %v2014_v13 }
  0xfa   : > { %v765_v57 = vpop.permute.xlu1 %764 }
  0xfb   : > { %vm841_vm5 = vcmp.eq.s32.totalorder %v2187_v5, %v765_v57 }
  0xfc   : > { %vm1799_vm6 = vmpackc.low %vm841_vm5, %vm840_vm4  ;;  %v675_v60 = vpop.permute.xlu0 %674 }
  0xfd   : > { %1800 = vmatprep.subr.msk.bf16.mxu1 %vm1799_vm6, %v2014_v13  ;;  %vm811_vm13 = vcmp.eq.s32.totalorder %v2187_v5, %v675_v60 }
  0xfe   : > { %v621_v59 = vpop.permute.xlu1 %620 }
  0xff   : > { %vm793_vm8 = vcmp.eq.s32.totalorder %v2187_v5, %v621_v59 }
 0x100   : > { %vm1769_vm9 = vmpackc.low %vm793_vm8, %vm792_vm7  ;;  %v771_v62 = vpop.permute.xlu0 %770 }
 0x101   : > { %1770 = vmatpush3.bf16.msk.msra.mxu0 %vm1769_vm9, %v2014_v13  ;;  %vm843_vm0 = vcmp.eq.s32.totalorder %v2187_v5, %v771_v62 }
 0x102   : > { %v717_v61 = vpop.permute.xlu1 %716 }
 0x103   : > { %vm825_vm11 = vcmp.eq.s32.totalorder %v2187_v5, %v717_v61 }
 0x104   : > { %vm1801_vm12 = vmpackc.low %vm825_vm11, %vm824_vm10  ;;  %v627_v0 = vpop.permute.xlu0 %626 }
 0x105   : > { %1802 = vmatpush3.bf16.msk.msra.mxu1 %vm1801_vm12, %v2014_v13  ;;  %vm795_vm3 = vcmp.eq.s32.totalorder %v2187_v5, %v627_v0 }
 0x106   : > { %v672_v63 = vpop.permute.xlu1 %671 }
 0x107   : > { %vm810_vm14 = vcmp.eq.s32.totalorder %v2187_v5, %v672_v63 }
 0x108   : > { %vm1771_vm15 = vmpackc.low %vm811_vm13, %vm810_vm14  ;;  %v723_v3 = vpop.permute.xlu0 %722 }
 0x109   : > { %1772 = vmatprep.subr.msk.bf16.mxu0 %vm1771_vm15, %v2014_v13  ;;  %vm827_vm6 = vcmp.eq.s32.totalorder %v2187_v5, %v723_v3 }
 0x10a   : > { %v768_v1 = vpop.permute.xlu1 %767 }
 0x10b   : > { %vm842_vm1 = vcmp.eq.s32.totalorder %v2187_v5, %v768_v1 }
 0x10c   : > { %vm1803_vm2 = vmpackc.low %vm843_vm0, %vm842_vm1  ;;  %v678_v6 = vpop.permute.xlu0 %677 }
 0x10d   : > { %1804 = vmatprep.subr.msk.bf16.mxu1 %vm1803_vm2, %v2014_v13  ;;  %vm812_vm9 = vcmp.eq.s32.totalorder %v2187_v5, %v678_v6 }
 0x10e   : > { %v624_v4 = vpop.permute.xlu1 %623 }
 0x10f   : > { %vm794_vm4 = vcmp.eq.s32.totalorder %v2187_v5, %v624_v4 }
 0x110   : > { %vm1773_vm5 = vmpackc.low %vm795_vm3, %vm794_vm4  ;;  %v774_v8 = vpop.permute.xlu0 %773 }
 0x111   : > { %1774 = vmatpush3.bf16.msk.msra.mxu0 %vm1773_vm5, %v2014_v13  ;;  %vm844_vm12 = vcmp.eq.s32.totalorder %v2187_v5, %v774_v8 }
 0x112   : > { %v720_v7 = vpop.permute.xlu1 %719 }
 0x113   : > { %vm826_vm7 = vcmp.eq.s32.totalorder %v2187_v5, %v720_v7 }
 0x114   : > { %vm1805_vm8 = vmpackc.low %vm827_vm6, %vm826_vm7  ;;  %v630_v10 = vpop.permute.xlu0 %629 }
 0x115   : > { %1806 = vmatpush3.bf16.msk.msra.mxu1 %vm1805_vm8, %v2014_v13  ;;  %vm796_vm15 = vcmp.eq.s32.totalorder %v2187_v5, %v630_v10 }
 0x116   : > { %v2288_v9 = vpop.permute.xlu1 %274 }
 0x118   : > { %v726_v12 = vpop.permute.xlu0 %725 }
 0x119   : > { %vm828_vm2 = vcmp.eq.s32.totalorder %v2187_v5, %v726_v12 }
 0x11a   : > { %v681_v11 = vpop.permute.xlu1 %680 }
 0x11b   : > { %vm813_vm10 = vcmp.eq.s32.totalorder %v2187_v5, %v681_v11 }
 0x11c   : > { %vm1775_vm11 = vmpackc.low %vm813_vm10, %vm812_vm9  ;;  %v2295_v15 = vpop.permute.xlu0 %279 }
 0x11d   : > { %1776 = vmatprep.subr.msk.bf16.mxu0 %vm1775_vm11, %v2014_v13 }
 0x11e   : > { %v777_v14 = vpop.permute.xlu1 %776 }
 0x11f   : > { %vm845_vm13 = vcmp.eq.s32.totalorder %v2187_v5, %v777_v14 }
 0x120   : > { %vm1807_vm14 = vmpackc.low %vm845_vm13, %vm844_vm12  ;;  %v687_v17 = vpop.permute.xlu0 %686 }
 0x121   : > { %1808 = vmatprep.subr.msk.bf16.mxu1 %vm1807_vm14, %v2014_v13  ;;  %vm815_vm5 = vcmp.eq.s32.totalorder %v2187_v5, %v687_v17 }
 0x122   : > { %v633_v16 = vpop.permute.xlu1 %632 }
 0x123   : > { %vm797_vm0 = vcmp.eq.s32.totalorder %v2187_v5, %v633_v16 }
 0x124   : > { %vm1777_vm1 = vmpackc.low %vm797_vm0, %vm796_vm15  ;;  %v783_v19 = vpop.permute.xlu0 %782 }
 0x125   : > { %1778 = vmatpush3.bf16.msk.msra.mxu0 %vm1777_vm1, %v2014_v13  ;;  %vm847_vm8 = vcmp.eq.s32.totalorder %v2187_v5, %v783_v19  ;;  %vm1224_vm1 = vcmask 261120  }
 0x126   : > { %v729_v18 = vpop.permute.xlu1 %728 }
 0x127   : > { %vm829_vm3 = vcmp.eq.s32.totalorder %v2187_v5, %v729_v18 }
 0x128   : > { %vm1809_vm4 = vmpackc.low %vm829_vm3, %vm828_vm2  ;;  %v639_v21 = vpop.permute.xlu0 %638 }
 0x129   : > { %1810 = vmatpush3.bf16.msk.msra.mxu1 %vm1809_vm4, %v2014_v13  ;;  %vm799_vm11 = vcmp.eq.s32.totalorder %v2187_v5, %v639_v21 }
 0x12a   : > { %v684_v20 = vpop.permute.xlu1 %683 }
 0x12b   : > { %vm814_vm6 = vcmp.eq.s32.totalorder %v2187_v5, %v684_v20 }
 0x12c   : > { %vm1779_vm7 = vmpackc.low %vm815_vm5, %vm814_vm6  ;;  %v735_v24 = vpop.permute.xlu0 %734 }
 0x12d   : > { %1780 = vmatprep.subr.msk.bf16.mxu0 %vm1779_vm7, %v2014_v13  ;;  %vm831_vm14 = vcmp.eq.s32.totalorder %v2187_v5, %v735_v24 }
 0x12e   : > { %v780_v22 = vpop.permute.xlu1 %779 }
 0x12f   : > { %vm846_vm9 = vcmp.eq.s32.totalorder %v2187_v5, %v780_v22 }
 0x130   : > { %vm1811_vm10 = vmpackc.low %vm847_vm8, %vm846_vm9 }
 0x131   : > { %1812 = vmatprep.subr.msk.bf16.mxu1 %vm1811_vm10, %v2014_v13  ;;  %v2328_v6 = vpop.permute.xlu0 %1147 }
 0x132   : > { %v636_v23 = vpop.permute.xlu1 %635 }
 0x133   : > { %vm798_vm12 = vcmp.eq.s32.totalorder %v2187_v5, %v636_v23 }
 0x134   : > { %vm1781_vm13 = vmpackc.low %vm799_vm11, %vm798_vm12 }
 0x135   : > { %1782 = vmatpush3.bf16.msk.msra.mxu0 %vm1781_vm13, %v2014_v13 }
 0x136   : > { %v732_v25 = vpop.permute.xlu1 %731 }
 0x137   : > { %vm830_vm15 = vcmp.eq.s32.totalorder %v2187_v5, %v732_v25 }
 0x138   : > { %vm1813_vm0 = vmpackc.low %vm831_vm14, %vm830_vm15 }
 0x139   : > { %1814 = vmatpush3.bf16.msk.msra.mxu1 %vm1813_vm0, %v2014_v13 }
 0x13a   : > { %v285_v48 = vpop.permute.xlu1 %284 }
 0x13f   : > { %v2330_v10 = vpop.permute.xlu1 %1151 }
 0x164   : > { %v398_v26 = vpop.f32.mrb[0].mxu0 }
 0x165   : > { %v399_v27 = vadd.f32 %v398_v26, %v2267_v58  ;;  %v487_v28 = vpop.f32.mrb[0].mxu1  ;;  %v400_v29 = vpop.f32.mrb[1].mxu0 }
 0x166   : > { %v488_v30 = vadd.f32 %v487_v28, %v2267_v58  ;;  %v401_v31 = vadd.f32 %v400_v29, %v2267_v58  ;;  %v489_v32 = vpop.f32.mrb[1].mxu1 }
 0x167   : > { %1883 = vtanh.f32 %v399_v27  ;;  %v490_v33 = vadd.f32 %v489_v32, %v2267_v58 }
 0x168   : > { %1885 = vtanh.f32 %v488_v30  ;;  %v404_v34 = vpop.f32.mrb[2].mxu0 }
 0x169   : > { %1887 = vtanh.f32 %v401_v31  ;;  %v405_v5 = vadd.f32 %v404_v34, %v2288_v9  ;;  %v493_v35 = vpop.f32.mrb[2].mxu1  ;;  %v406_v13 = vpop.f32.mrb[3].mxu0 }
 0x16a   : > { %1889 = vtanh.f32 %v490_v33  ;;  %v494_v36 = vadd.f32 %v493_v35, %v2288_v9  ;;  %v407_v37 = vadd.f32 %v406_v13, %v2288_v9  ;;  %v495_v38 = vpop.f32.mrb[3].mxu1 }
 0x16b   : > { %1891 = vtanh.f32 %v405_v5  ;;  %v496_v39 = vadd.f32 %v495_v38, %v2288_v9 }
 0x16c   : > { %1893 = vtanh.f32 %v494_v36  ;;  %v410_v40 = vpop.f32.mrb[4].mxu0 }
 0x16d   : > { %1895 = vtanh.f32 %v407_v37  ;;  %v411_v41 = vadd.f32 %v410_v40, %v2295_v15  ;;  %v499_v42 = vpop.f32.mrb[4].mxu1  ;;  %v412_v43 = vpop.f32.mrb[5].mxu0 }
 0x16e   : > { %1897 = vtanh.f32 %v496_v39  ;;  %v500_v44 = vadd.f32 %v499_v42, %v2295_v15  ;;  %v413_v45 = vadd.f32 %v412_v43, %v2295_v15  ;;  %v501_v46 = vpop.f32.mrb[5].mxu1 }
 0x16f   : > { %1899 = vtanh.f32 %v411_v41  ;;  %v502_v47 = vadd.f32 %v501_v46, %v2295_v15  ;;  %v2342_v46 = vpop.permute.xlu1 %1155 }
 0x170   : > { %1901 = vtanh.f32 %v500_v44  ;;  %v416_v49 = vpop.f32.mrb[6].mxu0  ;;  %v2340_v44 = vpop.permute.xlu0 %1159 }
 0x171   : > { %v1884_v50 = vpop.eup %1883  ;;  %1903 = vtanh.f32 %v413_v45  ;;  %v417_v51 = vadd.f32 %v416_v49, %v285_v48  ;;  %v505_v52 = vpop.f32.mrb[6].mxu1 }
 0x172   : > { %v418_v53 = vpop.f32.mrb[7].mxu0  ;;  %v1886_v54 = vpop.eup %1885  ;;  %1905 = vtanh.f32 %v502_v47  ;;  %v506_v55 = vadd.f32 %v505_v52, %v285_v48  ;;  %v1176_v58 = vmul.f32 %v1884_v50, %v1884_v50 }
 0x173   : > { %v419_v56 = vadd.f32 %v418_v53, %v285_v48  ;;  %v507_v57 = vpop.f32.mrb[7].mxu1  ;;  %v1888_v59 = vpop.eup %1887  ;;  %1907 = vtanh.f32 %v417_v51  ;;  %v1178_v61 = vmul.f32 %v1886_v54, %v1886_v54 }
 0x174   : > { %v508_v60 = vadd.f32 %v507_v57, %v285_v48  ;;  %v1890_v62 = vpop.eup %1889  ;;  %1909 = vtanh.f32 %v506_v55  ;;  %1040 = vmatprep.mubr.f32.mxu0 %v1888_v59  ;;  %v1177_v63 = vmul.f32 %v1888_v59, %v1888_v59  ;;  %v1192_v1 = vsub.f32 1.0, %v1176_v58 }
 0x175   : > { %v1892_v0 = vpop.eup %1891  ;;  %1911 = vtanh.f32 %v419_v56  ;;  %1125 = vmatprep.mubr.f32.mxu1 %v1890_v62  ;;  %1041 = vmatmul.mubr.f32.vlgmr.msra.gmra.mrb[8].mxu0 %v1884_v50  ;;  %v1179_v3 = vmul.f32 %v1890_v62, %v1890_v62  ;;  %v1194_v7 = vsub.f32 1.0, %v1178_v61 }
 0x176   : > { %v1894_v4 = vpop.eup %1893  ;;  %1913 = vtanh.f32 %v508_v60  ;;  %1126 = vmatmul.mubr.f32.vlgmr.msra.gmra.mrb[8].mxu1 %v1886_v54  ;;  %v1180_v8 = vmul.f32 %v1892_v0, %v1892_v0  ;;  %v1193_v12 = vsub.f32 1.0, %v1177_v63  ;;  %v1208_v19 = vmul.f32 %v1192_v1, %v2328_v6 }
 0x177   : > { %v1896_v9 = vpop.eup %1895  ;;  %v1182_v11 = vmul.f32 %v1894_v4, %v1894_v4  ;;  %v1195_v17 = vsub.f32 1.0, %v1179_v3  ;;  %v1210_v23 = vmul.f32 %v1194_v7, %v2328_v6 }
 0x178   : > { %v1898_v14 = vpop.eup %1897  ;;  %1045 = vmatprep.mubr.f32.mxu0 %v1896_v9  ;;  %v1196_v15 = vsub.f32 1.0, %v1180_v8  ;;  %v1181_v16 = vmul.f32 %v1896_v9, %v1896_v9  ;;  %v1209_v30 = vmul.f32 %v1193_v12, %v2328_v6  ;;  %v1915_v9 = vld [vmem:[%s2444_s1] sm:$0xff] }
 0x179   : > { %v1900_v18 = vpop.eup %1899  ;;  %1130 = vmatprep.mubr.f32.mxu1 %v1898_v14  ;;  %v1198_v20 = vsub.f32 1.0, %v1182_v11  ;;  %1046 = vmatmul.mubr.f32.gmra.mrb[10].mxu0 %v1892_v0  ;;  %v1183_v21 = vmul.f32 %v1898_v14, %v1898_v14  ;;  %v1211_v5 = vmul.f32 %v1195_v17, %v2328_v6 }
 0x17a   : > { %v1902_v22 = vpop.eup %1901  ;;  %v1212_v24 = vmul.f32 %v1196_v15, %v2330_v10  ;;  %1131 = vmatmul.mubr.f32.gmra.mrb[10].mxu1 %v1894_v4  ;;  %v1184_v25 = vmul.f32 %v1900_v18, %v1900_v18  ;;  %v1197_v26 = vsub.f32 1.0, %v1181_v16 }
 0x17b   : > { %v1904_v27 = vpop.eup %1903  ;;  %v1214_v28 = vmul.f32 %v1198_v20, %v2330_v10  ;;  %v1186_v29 = vmul.f32 %v1902_v22, %v1902_v22  ;;  %v1199_v31 = vsub.f32 1.0, %v1183_v21 }
 0x17c   : > { %v1906_v32 = vpop.eup %1905  ;;  %1050 = vmatprep.mubr.f32.mxu0 %v1904_v27  ;;  %v1185_v33 = vmul.f32 %v1904_v27, %v1904_v27  ;;  %v1213_v34 = vmul.f32 %v1197_v26, %v2330_v10  ;;  %v1817_v35 = vpack.c.bf16 %v1212_v24, %v1208_v19  ;;  %v1200_v41 = vsub.f32 1.0, %v1184_v25 }
 0x17d   : > { %v1908_v13 = vpop.eup %1907  ;;  %1135 = vmatprep.mubr.f32.mxu1 %v1906_v32  ;;  %v1187_v36 = vmul.f32 %v1906_v32, %v1906_v32  ;;  %1051 = vmatmul.mubr.f32.gmra.mrb[12].mxu0 %v1900_v18  ;;  %v1215_v37 = vmul.f32 %v1199_v31, %v2330_v10  ;;  %v1825_v38 = vpack.c.bf16 %v1214_v28, %v1210_v23  ;;  %v1202_v47 = vsub.f32 1.0, %v1186_v29 }
 0x17e   : > { %v1910_v39 = vpop.eup %1909  ;;  %v1188_v40 = vmul.f32 %v1908_v13, %v1908_v13  ;;  %1136 = vmatmul.mubr.f32.gmra.mrb[12].mxu1 %v1902_v22  ;;  %v1815_v42 = vpack.c.bf16 %v1213_v34, %v1209_v30  ;;  %v1201_v52 = vsub.f32 1.0, %v1185_v33  ;;  %v1216_v58 = vmul.f32 %v1200_v41, %v2342_v46 }
 0x17f   : > { %v1912_v43 = vpop.eup %1911  ;;  %v1190_v45 = vmul.f32 %v1910_v39, %v1910_v39  ;;  %v1823_v48 = vpack.c.bf16 %v1215_v37, %v1211_v5  ;;  %v1203_v55 = vsub.f32 1.0, %v1187_v36  ;;  %v1218_v61 = vmul.f32 %v1202_v47, %v2342_v46 }
 0x180   : > { %v1914_v49 = vpop.eup %1913  ;;  %v1189_v50 = vmul.f32 %v1912_v43, %v1912_v43  ;;  %v1204_v51 = vsub.f32 1.0, %v1188_v40  ;;  %1055 = vmatprep.mubr.f32.mxu0 %v1912_v43  ;;  %1816 = vmatprep.subr.bf16.mxu0 %v1815_v42  ;;  %v1217_v63 = vmul.f32 %v1201_v52, %v2342_v46 }
 0x181   : > { %v1191_v53 = vmul.f32 %v1914_v49, %v1914_v49  ;;  %v1206_v54 = vsub.f32 1.0, %v1190_v45  ;;  %1140 = vmatprep.mubr.f32.mxu1 %v1914_v49  ;;  %1824 = vmatprep.subr.bf16.mxu1 %v1823_v48  ;;  %v1219_v3 = vmul.f32 %v1203_v55, %v2342_v46 }
 0x182   : > { %v1205_v56 = vsub.f32 1.0, %v1189_v50  ;;  %v1220_v57 = vmul.f32 %v1204_v51, %v2340_v44  ;;  %1056 = vmatmul.mubr.f32.gmra.mrb[14].mxu0 %v1908_v13  ;;  %1141 = vmatmul.mubr.f32.gmra.mrb[14].mxu1 %v1910_v39 }
 0x183   : > { %v1207_v59 = vsub.f32 1.0, %v1191_v53  ;;  %v1222_v60 = vmul.f32 %v1206_v54, %v2340_v44  ;;  %1818 = vmatpush1.bf16.msra.mxu0 %v1817_v35  ;;  %1826 = vmatpush1.bf16.msra.mxu1 %v1825_v38 }
 0x184   : > { %v1221_v62 = vmul.f32 %v1205_v56, %v2340_v44  ;;  %v1821_v0 = vpack.c.bf16 %v1220_v57, %v1216_v58  ;;  %1292 = vmatprep.mubr.f32.mxu0 %v2013_v2  ;;  %1363 = vmatprep.mubr.f32.mxu1 %v2013_v2 }
 0x185   : > { %v1223_v1 = vmul.f32 %v1207_v59, %v2340_v44  ;;  %v1829_v4 = vpack.c.bf16 %v1222_v60, %v1218_v61 }
 0x186   : > { %v1819_v7 = vpack.c.bf16 %v1221_v62, %v1217_v63 }
 0x187   : > { %v1827_v8 = vpack.c.bf16 %v1223_v1, %v1219_v3 }
 0x188   : > { %1820 = vmatprep.subr.bf16.mxu0 %v1819_v7 }
 0x189   : > { %1828 = vmatprep.subr.bf16.mxu1 %v1827_v8  ;;  %1822 = vmatpush1.bf16.msra.mxu0 %v1821_v0 }
 0x18a   : > { %1830 = vmatpush1.bf16.msra.mxu1 %v1829_v4 }
 0x18c   : > { %1654 = vmatmul.mubr.msk.f32.vlgmr.msra.gmra.mrb[16].mxu0 %vm1224_vm1, %v1915_v9 }
 0x18d   : > { %1655 = vmatmul.mubr.msk.f32.vlgmr.msra.gmra.mrb[16].mxu1 %vm1224_vm1, %v1915_v9 }
 0x248   : > { %v1695_v11 = vpop.f32.mrb[8].mxu0 }
 0x249   : > { %v1739_v2 = vpop.f32.mrb[8].mxu1  ;;  %v1696_v12 = vpop.f32.mrb[9].mxu0 }
 0x24a   : > { %v1697_v14 = vadd.f32 %v1696_v12, %v1695_v11  ;;  %v1740_v15 = vpop.f32.mrb[9].mxu1 }
 0x24b   : > { %v1741_v16 = vadd.f32 %v1740_v15, %v1739_v2 }
 0x24c   : > { %v1698_v17 = vpop.f32.mrb[10].mxu0 }
 0x24d   : > { %v1128_v18 = vadd.f32 %v1741_v16, %v1697_v14  ;;  %v1742_v19 = vpop.f32.mrb[10].mxu1  ;;  %v1699_v20 = vpop.f32.mrb[11].mxu0 }
 0x24e   : > { %v1700_v21 = vadd.f32 %v1699_v20, %v1698_v17  ;;  %v1743_v22 = vpop.f32.mrb[11].mxu1 }
 0x24f   : > { %v1744_v23 = vadd.f32 %v1743_v22, %v1742_v19  ;;  %v1162_v30 = vmul.f32 %v2328_v6, %v1128_v18 }
 0x250   : > { %v1701_v24 = vpop.f32.mrb[12].mxu0 }
 0x251   : > { %v1133_v25 = vadd.f32 %v1744_v23, %v1700_v21  ;;  %v1745_v26 = vpop.f32.mrb[12].mxu1  ;;  %v1702_v27 = vpop.f32.mrb[13].mxu0 }
 0x252   : > { %v1703_v28 = vadd.f32 %v1702_v27, %v1701_v24  ;;  %v1746_v29 = vpop.f32.mrb[13].mxu1 }
 0x253   : > { %v1163_v31 = vmul.f32 %v2330_v10, %v1133_v25  ;;  %v1747_v32 = vadd.f32 %v1746_v29, %v1745_v26 }
 0x255   : > { %v1166_v33 = vadd.f32 %v1163_v31, %v1162_v30  ;;  %v1138_v34 = vadd.f32 %v1747_v32, %v1703_v28  ;;  %v1704_v5 = vpop.f32.mrb[14].mxu0  ;;  %v1748_v35 = vpop.f32.mrb[14].mxu1 }
 0x256   : > { %v1705_v13 = vpop.f32.mrb[15].mxu0  ;;  %v1749_v36 = vpop.f32.mrb[15].mxu1 }
 0x257   : > { %v1164_v37 = vmul.f32 %v2342_v46, %v1138_v34  ;;  %v1706_v38 = vadd.f32 %v1705_v13, %v1704_v5  ;;  %v1750_v39 = vadd.f32 %v1749_v36, %v1748_v35 }
 0x259   : > { %v1167_v40 = vadd.f32 %v1166_v33, %v1164_v37  ;;  %v1143_v41 = vadd.f32 %v1750_v39, %v1706_v38 }
 0x25b   : > { %v1165_v6 = vmul.f32 %v2340_v44, %v1143_v41 }
 0x25d   : > { %v1168_v10 = vadd.f32 %v1167_v40, %v1165_v6 }
 0x25f   : > { %v1169_v42 = vrot.slane %v1168_v10, 4  ;;  %v1294_v43 = vpop.f32.mrb[16].mxu0 }
 0x260   : > { %v1370_v45 = vsub.f32 0.0, %v1294_v43  ;;  %v1365_v47 = vpop.f32.mrb[16].mxu1  ;;  %v1296_v48 = vpop.f32.mrb[17].mxu0 }
 0x261   : > { %v1170_v49 = vadd.f32 %v1169_v42, %v1168_v10  ;;  %v1372_v46 = vsub.f32 0.0, %v1365_v47  ;;  %v1371_v50 = vsub.f32 0.0, %v1296_v48  ;;  %v1367_v51 = vpop.f32.mrb[17].mxu1 }
 0x262   : > { %1374 = vst [vmem:[%s244_s14] sm:$0xff] %v1370_v45  ;;  %v1373_v52 = vsub.f32 0.0, %v1367_v51 }
 0x263   : > { %1376 = vst [vmem:[%s244_s14 + $0x10] sm:$0xff] %v1372_v46  ;;  %1375 = vst [vmem:[%s244_s14 + $0x8] sm:$0xff] %v1371_v50  ;;  %v1171_v44 = vrot.slane %v1170_v49, 2 }
 0x264   : > { %1377 = vst [vmem:[%s244_s14 + $0x18] sm:$0xff] %v1373_v52 }
 0x265   : > { %v1172_v53 = vadd.f32 %v1171_v44, %v1170_v49 }
 0x266   : > { %1929 = shalt.err (!%p1926_p4)
}
 0x267   : > { %s1930_s8 = scalar_lea.hbm %s2369_s23, 512  ;;  %s1934_s12 = scalar_lea.hbm %s2448_s5, 1024 }
 0x268   : > { %p1931_p7 = scmp.ne.s32.totalorder %s2369_s23, %s1930_s8  ;;  %p1935_p10 = scmp.lt.u32.totalorder %s2369_s23, %s2448_s5 }
 0x269   : > { %p1936_p11 = scmp.lt.u32.totalorder %s1934_s12, %s1930_s8  ;;  %p1938_p13 = scmp.lt.u32.totalorder %s1930_s8, %s2369_s23 }
 0x26a   : > { %p1932_p8 = pnand %p1931_p7, %p2086_p5 }
 0x26b   : > { %p1937_p12 = por %p1936_p11, %p1935_p10 }
 0x26c   : > { %p1933_p9 = pneg %p1932_p8 }
 0x26d   : > { %p1939_p0 = por %p1938_p13, %p1937_p12 }
 0x26f   : > { %p1940_p1 = pnand %p1939_p0, %p1933_p9 }
 0x271   : > { %1943 = shalt.err (!%p1940_p1)
}
 0x272   : > { %1832 = dma.vmem_to_hbm [thread:$0]  (%p2086_p5), %s2371_s15, 512, %s2369_s23, %s1383_s25   ;;  %v1173_v54 = vrot.slane %v1172_v53, 1 }
 0x273   : > { %s1657_s16 = sshll.u32 %s2069_s22, 4  ;;  %s237_s17 = scalar_lea.vmem [#allocation2], %s2360_s11 }
 0x274   : > { %s1396_s26 = sshll.u32 %s237_s17, 4  ;;  %v1174_v55 = vadd.f32 %v1173_v54, %v1172_v53  ;;  %s2400_s7 = scalar_lea.hbm %s2447_s4, %s1657_s16  ;;  %s2402_s26 = int_to_ptr.vmem [resolvable:$true] %s1396_s26 }
 0x275   : > { %s1379_s8 = scalar_lea.sflag [#allocation3], %s2360_s11  ;;  %s1944_s9 = scalar_lea.vmem %s2402_s26, 16 }
 0x276   : > { %1175 = vst [vmem:[%s237_s17] sm:$0x1] %v1174_v55  ;;  %p1945_p2 = scmp.ne.s32.totalorder %s2402_s26, %s1944_s9  ;;  %s2017_s22 = smov [#allocation2]  }
 0x277   : > { %s1948_s15 = sshll.u32 %s2017_s22, 4  ;;  %s1949_s15 = int_to_ptr.vmem [resolvable:$false] %s1948_s15 }
 0x278   : > { %p1946_p3 = pnand %p1945_p2, %p2086_p5  ;;  %s1950_s23 = scalar_lea.vmem %s1949_s15, 32 }
 0x279   : > { %p1951_p7 = scmp.lt.s32.totalorder %s2402_s26, %s1949_s15  ;;  %p1952_p8 = scmp.lt.s32.totalorder %s1950_s23, %s1944_s9 }
 0x27a   : > { %p1947_p4 = pneg %p1946_p3 }
 0x27b   : > { %p1953_p9 = por %p1952_p8, %p1951_p7 }
 0x27d   : > { %p1954_p10 = pnand %p1953_p9, %p1947_p4 }
 0x27f   : > { %1957 = shalt.err (!%p1954_p10)
}
 0x280   : > { %s1958_s11 = scalar_lea.hbm %s2400_s7, 16  ;;  %s1962_s12 = scalar_lea.hbm %s2447_s4, 32 }
 0x281   : > { %p1959_p11 = scmp.ne.s32.totalorder %s2400_s7, %s1958_s11  ;;  %p1963_p0 = scmp.lt.u32.totalorder %s2400_s7, %s2447_s4 }
 0x282   : > { %p1964_p1 = scmp.lt.u32.totalorder %s1962_s12, %s1958_s11  ;;  %p1966_p3 = scmp.lt.u32.totalorder %s1958_s11, %s2400_s7 }
 0x283   : > { %p1960_p12 = pnand %p1959_p11, %p2086_p5 }
 0x284   : > { %p1965_p2 = por %p1964_p1, %p1963_p0 }
 0x285   : > { %p1961_p13 = pneg %p1960_p12 }
 0x286   : > { %p1967_p4 = por %p1966_p3, %p1965_p2 }
 0x288   : > { %p1968_p7 = pnand %p1967_p4, %p1961_p13 }
 0x28a   : > { %1971 = shalt.err (!%p1968_p7)
}
 0x28b   : > { %1831 = dma.vmem_to_hbm [thread:$0]  (%p2086_p5), %s2402_s26, 16, %s2400_s7, %s1379_s8  }
 0x28c PF: > { %p1842_p8 = scmp.ge.s32.totalorder %s2010_s21, 2  ;;  %s1422_s16 = sand.u32 1, %s1998_s18  }
 0x28d   : > { %s1423_s17 = scalar_lea.sflag [#allocation3], %s1422_s16 }
 0x28e   : > { %p1836_p9 = pnand %p1842_p8, %p2090_p6 }
 0x290   : > { %1989 = dma.done.wait (!%p1836_p9), %s1423_s17, 16  }
 0x291   : > { %1991 = vsyncadd (!%p1836_p9), %s1423_s17, 4294967280  ;;  %s1431_s30 = scalar_lea.sflag [#allocation5], %s1422_s16 }
 0x292   : > { %1993 = dma.done.wait (!%p1836_p9), %s1431_s30, 512  }
 0x293   : > { %1995 = vsyncadd (!%p1836_p9), %s1431_s30, 4294966784  ;;  %p19_p5 = scmp.ge.s32.totalorder %s2073_s24, 4   ;;  %s2451_s18 = smov %s2002_s19 }
 0x294   : > { %s2452_s19 = smov %s2006_s20  ;;  %s2453_s20 = smov %s2084_s27 }
 0x295   : > { %s2454_s21 = smov %s2073_s24  ;;  %21 = sbr.rel (!%p19_p5) target bundleno = 5 (0x5), region = 91 }
 0x29c   :  { %1436 = vsyncpa [#allocation3], 1 }
 0x29d   :  { %1438 = vsyncpa [#allocation3 + $0x1], 1 }
 0x29e   :  { %1439 = vsyncpa [#allocation5], 1 }
 0x29f   :  { %1441 = vsyncpa [#allocation5 + $0x1], 1 }

</bundles_post_ra>
